<compile_context>
chip_gen: v5e
topology: v5e:2x2
jax: 0.10.0
libtpu: 0.0.40
codegen_flags: <defaults>
</compile_context>

<pallas_src>
import functools

import numpy as np
import jax
import jax.numpy as jnp
from jax import lax
from jax.experimental import pallas as pl
from jax.experimental.pallas import tpu as pltpu

_INT_MIN = -2147483648


def _ref_mask_kernel(cov_ref, sim_ref, out_ref, *, topk, hw, thresh, fixk):
    # cov_ref: (1, 2, HW) f32   sim_ref: (1, topk, HW) f32   out_ref: (1, topk, HW) i8
    cov = cov_ref[0]                              # (2, HW)
    sim = sim_ref[0]                              # (topk, HW)

    in_mask = cov[0:1, :] > thresh                # (1, HW)  (zero padding is <= thresh)
    ref_vis = cov[1:2, :] > thresh                # (1, HW)

    count_in = jnp.sum(in_mask.astype(jnp.int32))
    count_ref = jnp.sum(ref_vis.astype(jnp.int32))
    # torch.clamp(min=1, max=topk*count_in): when min > max torch returns max (=0),
    # which matches the min-then-max ordering below.
    k = jnp.minimum(jnp.maximum(count_ref, 1), topk * count_in)

    vis = jnp.broadcast_to(in_mask, (topk, hw))   # visibility repeated across topk

    # Order-preserving int32 key for float32 similarities (radix-sortable):
    #   x >= 0 : key = bits(x)            x < 0 : key = bits(x) ^ 0x7FFFFFFF
    bits = pltpu.bitcast(sim, jnp.int32)
    key = jnp.where(bits >= 0, bits, bits ^ jnp.int32(0x7FFFFFFF))

    # ---- Stage 1: radix-select theta = k-th largest visible key (32 counting passes).
    def count_ge(c):
        return jnp.sum((vis & (key >= c)).astype(jnp.int32))

    cnt_top = count_ge(jnp.int32(0))                          # bit 31 (sign) handled first
    prefix0 = jnp.where(cnt_top >= k, jnp.int32(0), jnp.int32(_INT_MIN))

    def body1(_, carry):
        prefix, bit = carry
        cand = prefix + bit
        cnt = count_ge(cand)
        prefix = jnp.where(cnt >= k, cand, prefix)
        return prefix, jnp.right_shift(bit, 1)

    theta, _ = lax.fori_loop(0, 31, body1, (prefix0, jnp.int32(1 << 30)))

    gt = vis & (key > theta)                       # strictly above threshold: always selected
    eq = vis & (key == theta)                      # on the threshold: tie-break by index
    c_gt = jnp.sum(gt.astype(jnp.int32))
    remaining = k - c_gt                           # how many threshold-valued positions to keep

    t_idx = lax.broadcasted_iota(jnp.int32, (topk, hw), 0)
    p_idx = lax.broadcasted_iota(jnp.int32, (topk, hw), 1)
    lin = t_idx * hw + p_idx                       # flattened (topk-major) index

    # ---- Stage 2: radix-select psi = `remaining`-th smallest lin among eq positions.
    nbits = max(1, (topk * hw - 1).bit_length())

    def count_le(c):
        return jnp.sum((eq & (lin <= c)).astype(jnp.int32))

    def body2(_, carry):
        prefix, bit = carry
        cnt = count_le(prefix + (bit - 1))         # can this bit stay 0?
        prefix = jnp.where(cnt >= remaining, prefix, prefix + bit)
        return prefix, jnp.right_shift(bit, 1)

    psi, _ = lax.fori_loop(0, nbits, body2,
                           (jnp.int32(0), jnp.int32(1 << (nbits - 1))))

    selected = gt | (eq & (lin <= psi))            # exactly k visible positions (k>=1 case)
    fixed = t_idx < fixk                           # ref_mask[:, :fixk] = True
    out_ref[0] = (selected | fixed).astype(jnp.int8)


def ref_mask_calculate(co_visible, pre_corr_relu3_1, shreshold=0.3, fixk=1):
    """JAX/Pallas equivalent of RefMaskCalculate.forward. Returns ref_mask_relu1 (bool)."""
    B, two, h, w = co_visible.shape
    assert two == 2
    _, topk, h_ref, w_ref = pre_corr_relu3_1.shape
    HW = h_ref * w_ref
    HW_pad = ((HW + 127) // 128) * 128             # lane-dense last dim in the general case

    # glue: zero-pad visibility to the reference resolution and flatten spatial dims.
    cov_pad = jnp.pad(co_visible.astype(jnp.float32),
                      ((0, 0), (0, 0), (0, h_ref - h), (0, w_ref - w)))
    cov_flat = cov_pad.reshape(B, 2, HW)
    sim_flat = pre_corr_relu3_1.astype(jnp.float32).reshape(B, topk, HW)
    if HW_pad != HW:
        cov_flat = jnp.pad(cov_flat, ((0, 0), (0, 0), (0, HW_pad - HW)))   # pad -> invisible
        sim_flat = jnp.pad(sim_flat, ((0, 0), (0, 0), (0, HW_pad - HW)),
                           constant_values=-jnp.inf)

    kernel = functools.partial(_ref_mask_kernel, topk=topk, hw=HW_pad,
                               thresh=float(shreshold), fixk=int(fixk))

    out_i8 = pl.pallas_call(
        kernel,
        out_shape=jax.ShapeDtypeStruct((B, topk, HW_pad), jnp.int8),
        grid=(B,),
        in_specs=[
            pl.BlockSpec((1, 2, HW_pad), lambda b: (b, 0, 0)),
            pl.BlockSpec((1, topk, HW_pad), lambda b: (b, 0, 0)),
        ],
        out_specs=pl.BlockSpec((1, topk, HW_pad), lambda b: (b, 0, 0)),
        compiler_params=pltpu.CompilerParams(dimension_semantics=("parallel",)),
    )(cov_flat, sim_flat)

    ref_mask_relu3 = out_i8[:, :, :HW].reshape(B, topk, h_ref, w_ref).astype(jnp.bool_)
    # glue: repeat_interleave(4, dim=2).repeat_interleave(4, dim=3) via broadcast+reshape
    m4 = jnp.broadcast_to(ref_mask_relu3[:, :, :, None, :, None],
                          (B, topk, h_ref, 4, w_ref, 4))
    return m4.reshape(B, topk, 4 * h_ref, 4 * w_ref)
    # TODO(synk): a second "parallel" grid axis for v7x dual-TC would need a two-phase
    # (partial-count / select) split because the top-k threshold is global per batch.


def _numpy_reference(co_visible, sim, shreshold=0.3, fixk=1):
    """Direct transcription of the PyTorch forward (numpy), for verification."""
    B, _, h, w = co_visible.shape
    _, topk, h_ref, w_ref = sim.shape
    out = np.zeros((B, topk, h_ref, w_ref), dtype=bool)
    for b in range(B):
        cin = np.pad(co_visible[b, 0], ((0, h_ref - h), (0, w_ref - w)))
        cref = np.pad(co_visible[b, 1], ((0, h_ref - h), (0, w_ref - w)))
        in_mask = cin > shreshold
        ref_mask = cref > shreshold
        cnt_in = int(in_mask.sum())
        cnt_ref = int(min(max(int(ref_mask.sum()), 1), topk * cnt_in))  # torch.clamp semantics
        vis_rep = np.broadcast_to(in_mask, (topk, h_ref, w_ref)).reshape(-1)
        sim_flat = sim[b].reshape(-1)
        vis_idx = np.nonzero(vis_rep)[0]
        if vis_idx.size > 0:
            vals = sim_flat[vis_idx]
            order = np.argsort(-vals, kind="stable")[:cnt_ref]
            flat = out[b].reshape(-1).copy()
            flat[vis_idx[order]] = True
            out[b] = flat.reshape(topk, h_ref, w_ref)
    out[:, :fixk] = True
    return np.repeat(np.repeat(out, 4, axis=2), 4, axis=3)


if __name__ == "__main__":
    key = jax.random.PRNGKey(0)
    k1, k2 = jax.random.split(key)

    B, h, w = 2, 12, 12
    topk, h_ref, w_ref = 8, 16, 16

    co_visible = jax.random.uniform(k1, (B, 2, h, w), dtype=jnp.float32)
    pre_corr = {"relu3_1": jax.random.normal(k2, (B, topk, h_ref, w_ref), dtype=jnp.float32)}

    out = ref_mask_calculate(co_visible, pre_corr["relu3_1"], shreshold=0.3, fixk=1)
    out = jax.block_until_ready(out)

    ref = _numpy_reference(np.asarray(co_visible), np.asarray(pre_corr["relu3_1"]),
                           shreshold=0.3, fixk=1)

    assert out.shape == (B, topk, 4 * h_ref, 4 * w_ref)
    assert out.dtype == jnp.bool_
    assert np.array_equal(np.asarray(out), ref)
    print("KERNEL_OK")
</pallas_src>

<mosaic_0001>
module attributes {stable_mosaic.version = 11 : i64} {
  func.func @_ref_mask_kernel(%arg0: i32, %arg1: memref<1x2x256xf32, #tpu.memory_space<vmem>>, %arg2: memref<1x8x256xf32, #tpu.memory_space<vmem>>, %arg3: memref<1x8x256xi8, #tpu.memory_space<vmem>>) attributes {dimension_semantics = [#tpu.dimension_semantics<parallel>], iteration_bounds = array<i64: 2>, scalar_prefetch = 0 : i64, scratch_operands = 0 : i64, tpu.core_type = #tpu.core_type<tc>, window_params = [{transform_indices = @transform_0, window_bounds = array<i64: 1, 2, 256>}, {transform_indices = @transform_1, window_bounds = array<i64: 1, 8, 256>}, {transform_indices = @transform_2, window_bounds = array<i64: 1, 8, 256>}]} {
    %c0 = arith.constant 0 : index
    %c0_0 = arith.constant 0 : index
    %c0_1 = arith.constant 0 : index
    %0 = vector.load %arg1[%c0, %c0_0, %c0_1] : memref<1x2x256xf32, #tpu.memory_space<vmem>>, vector<1x2x256xf32>
    %1 = vector.shape_cast %0 : vector<1x2x256xf32> to vector<2x256xf32>
    %c0_2 = arith.constant 0 : index
    %c0_3 = arith.constant 0 : index
    %c0_4 = arith.constant 0 : index
    %2 = vector.load %arg2[%c0_2, %c0_3, %c0_4] : memref<1x8x256xf32, #tpu.memory_space<vmem>>, vector<1x8x256xf32>
    %3 = vector.shape_cast %2 : vector<1x8x256xf32> to vector<8x256xf32>
    %4 = vector.extract_strided_slice %1 {offsets = [0, 0], sizes = [1, 256], strides = [1, 1]} : vector<2x256xf32> to vector<1x256xf32>
    %cst = arith.constant 3.000000e-01 : f32
    %5 = vector.broadcast %cst : f32 to vector<1x256xf32>
    %6 = arith.cmpf ogt, %4, %5 : vector<1x256xf32>
    %7 = vector.extract_strided_slice %1 {offsets = [1, 0], sizes = [1, 256], strides = [1, 1]} : vector<2x256xf32> to vector<1x256xf32>
    %cst_5 = arith.constant 3.000000e-01 : f32
    %8 = vector.broadcast %cst_5 : f32 to vector<1x256xf32>
    %9 = arith.cmpf ogt, %7, %8 : vector<1x256xf32>
    %10 = arith.extui %6 : vector<1x256xi1> to vector<1x256xi32>
    %11 = vector.shape_cast %10 : vector<1x256xi32> to vector<1x1x256xi32>
    %cst_6 = arith.constant dense<0> : vector<1xi32>
    %12 = vector.multi_reduction <add>, %11, %cst_6 [1, 2] : vector<1x1x256xi32> to vector<1xi32>
    %13 = vector.shape_cast %12 : vector<1xi32> to vector<1x1x1xi32>
    %14 = vector.extract %13[0, 0, 0] : i32 from vector<1x1x1xi32>
    %15 = arith.extui %9 : vector<1x256xi1> to vector<1x256xi32>
    %16 = vector.shape_cast %15 : vector<1x256xi32> to vector<1x1x256xi32>
    %cst_7 = arith.constant dense<0> : vector<1xi32>
    %17 = vector.multi_reduction <add>, %16, %cst_7 [1, 2] : vector<1x1x256xi32> to vector<1xi32>
    %18 = vector.shape_cast %17 : vector<1xi32> to vector<1x1x1xi32>
    %19 = vector.extract %18[0, 0, 0] : i32 from vector<1x1x1xi32>
    %c1_i32 = arith.constant 1 : i32
    %20 = arith.maxsi %19, %c1_i32 : i32
    %c8_i32 = arith.constant 8 : i32
    %21 = arith.muli %c8_i32, %14 : i32
    %22 = arith.minsi %20, %21 : i32
    %23 = vector.shape_cast %6 : vector<1x256xi1> to vector<1x256xi1>
    %24 = vector.broadcast %23 : vector<1x256xi1> to vector<8x256xi1>
    %25 = tpu.bitcast %3 : vector<8x256xf32> -> vector<8x256xi32>
    %c0_i32 = arith.constant 0 : i32
    %26 = vector.broadcast %c0_i32 : i32 to vector<8x256xi32>
    %27 = arith.cmpi sge, %25, %26 : vector<8x256xi32>
    %c2147483647_i32 = arith.constant 2147483647 : i32
    %28 = vector.broadcast %c2147483647_i32 : i32 to vector<8x256xi32>
    %29 = arith.xori %25, %28 : vector<8x256xi32>
    %30 = arith.select %27, %25, %29 : vector<8x256xi1>, vector<8x256xi32>
    %c0_i32_8 = arith.constant 0 : i32
    %31 = vector.broadcast %c0_i32_8 : i32 to vector<8x256xi32>
    %32 = arith.cmpi sge, %30, %31 : vector<8x256xi32>
    %33 = arith.andi %24, %32 : vector<8x256xi1>
    %34 = arith.extui %33 : vector<8x256xi1> to vector<8x256xi32>
    %35 = vector.shape_cast %34 : vector<8x256xi32> to vector<1x8x256xi32>
    %cst_9 = arith.constant dense<0> : vector<1xi32>
    %36 = vector.multi_reduction <add>, %35, %cst_9 [1, 2] : vector<1x8x256xi32> to vector<1xi32>
    %37 = vector.shape_cast %36 : vector<1xi32> to vector<1x1x1xi32>
    %38 = vector.extract %37[0, 0, 0] : i32 from vector<1x1x1xi32>
    %39 = arith.cmpi sge, %38, %22 : i32
    %c0_i32_10 = arith.constant 0 : i32
    %c-2147483648_i32 = arith.constant -2147483648 : i32
    %40 = arith.select %39, %c0_i32_10, %c-2147483648_i32 : i32
    %c1073741824_i32 = arith.constant 1073741824 : i32
    %c0_i32_11 = arith.constant 0 : i32
    %c31_i32 = arith.constant 31 : i32
    %41 = arith.addi %c0_i32_11, %c31_i32 : i32
    %c1_i32_12 = arith.constant 1 : i32
    %42:2 = scf.for %arg4 = %c0_i32_11 to %41 step %c1_i32_12 iter_args(%arg5 = %40, %arg6 = %c1073741824_i32) -> (i32, i32)  : i32 {
      %73 = arith.addi %arg5, %arg6 : i32
      %74 = vector.broadcast %73 : i32 to vector<8x256xi32>
      %75 = arith.cmpi sge, %30, %74 : vector<8x256xi32>
      %76 = arith.andi %24, %75 : vector<8x256xi1>
      %77 = arith.extui %76 : vector<8x256xi1> to vector<8x256xi32>
      %78 = vector.shape_cast %77 : vector<8x256xi32> to vector<1x8x256xi32>
      %cst_21 = arith.constant dense<0> : vector<1xi32>
      %79 = vector.multi_reduction <add>, %78, %cst_21 [1, 2] : vector<1x8x256xi32> to vector<1xi32>
      %80 = vector.shape_cast %79 : vector<1xi32> to vector<1x1x1xi32>
      %81 = vector.extract %80[0, 0, 0] : i32 from vector<1x1x1xi32>
      %82 = arith.cmpi sge, %81, %22 : i32
      %83 = arith.select %82, %73, %arg5 : i32
      %c1_i32_22 = arith.constant 1 : i32
      %84 = arith.shrsi %arg6, %c1_i32_22 : i32
      scf.yield %83, %84 : i32, i32
    }
    %43 = vector.broadcast %42#0 : i32 to vector<8x256xi32>
    %44 = arith.cmpi sgt, %30, %43 : vector<8x256xi32>
    %45 = arith.andi %24, %44 : vector<8x256xi1>
    %46 = vector.broadcast %42#0 : i32 to vector<8x256xi32>
    %47 = arith.cmpi eq, %30, %46 : vector<8x256xi32>
    %48 = arith.andi %24, %47 : vector<8x256xi1>
    %49 = arith.extui %45 : vector<8x256xi1> to vector<8x256xi32>
    %50 = vector.shape_cast %49 : vector<8x256xi32> to vector<1x8x256xi32>
    %cst_13 = arith.constant dense<0> : vector<1xi32>
    %51 = vector.multi_reduction <add>, %50, %cst_13 [1, 2] : vector<1x8x256xi32> to vector<1xi32>
    %52 = vector.shape_cast %51 : vector<1xi32> to vector<1x1x1xi32>
    %53 = vector.extract %52[0, 0, 0] : i32 from vector<1x1x1xi32>
    %54 = arith.subi %22, %53 : i32
    %55 = tpu.iota {dimensions = array<i32: 0>} : vector<8x256xi32>
    %56 = tpu.iota {dimensions = array<i32: 1>} : vector<8x256xi32>
    %c256_i32 = arith.constant 256 : i32
    %57 = vector.broadcast %c256_i32 : i32 to vector<8x256xi32>
    %58 = arith.muli %55, %57 : vector<8x256xi32>
    %59 = arith.addi %58, %56 : vector<8x256xi32>
    %c0_i32_14 = arith.constant 0 : i32
    %c1024_i32 = arith.constant 1024 : i32
    %c0_i32_15 = arith.constant 0 : i32
    %c11_i32 = arith.constant 11 : i32
    %60 = arith.addi %c0_i32_15, %c11_i32 : i32
    %c1_i32_16 = arith.constant 1 : i32
    %61:2 = scf.for %arg4 = %c0_i32_15 to %60 step %c1_i32_16 iter_args(%arg5 = %c0_i32_14, %arg6 = %c1024_i32) -> (i32, i32)  : i32 {
      %c1_i32_21 = arith.constant 1 : i32
      %73 = arith.subi %arg6, %c1_i32_21 : i32
      %74 = arith.addi %arg5, %73 : i32
      %75 = vector.broadcast %74 : i32 to vector<8x256xi32>
      %76 = arith.cmpi sle, %59, %75 : vector<8x256xi32>
      %77 = arith.andi %48, %76 : vector<8x256xi1>
      %78 = arith.extui %77 : vector<8x256xi1> to vector<8x256xi32>
      %79 = vector.shape_cast %78 : vector<8x256xi32> to vector<1x8x256xi32>
      %cst_22 = arith.constant dense<0> : vector<1xi32>
      %80 = vector.multi_reduction <add>, %79, %cst_22 [1, 2] : vector<1x8x256xi32> to vector<1xi32>
      %81 = vector.shape_cast %80 : vector<1xi32> to vector<1x1x1xi32>
      %82 = vector.extract %81[0, 0, 0] : i32 from vector<1x1x1xi32>
      %83 = arith.cmpi sge, %82, %54 : i32
      %84 = arith.addi %arg5, %arg6 : i32
      %85 = arith.select %83, %arg5, %84 : i32
      %c1_i32_23 = arith.constant 1 : i32
      %86 = arith.shrsi %arg6, %c1_i32_23 : i32
      scf.yield %85, %86 : i32, i32
    }
    %62 = vector.broadcast %61#0 : i32 to vector<8x256xi32>
    %63 = arith.cmpi sle, %59, %62 : vector<8x256xi32>
    %64 = arith.andi %48, %63 : vector<8x256xi1>
    %65 = arith.ori %45, %64 : vector<8x256xi1>
    %c1_i32_17 = arith.constant 1 : i32
    %66 = vector.broadcast %c1_i32_17 : i32 to vector<8x256xi32>
    %67 = arith.cmpi slt, %55, %66 : vector<8x256xi32>
    %68 = arith.ori %65, %67 : vector<8x256xi1>
    %69 = arith.extui %68 : vector<8x256xi1> to vector<8x256xi8>
    %c0_18 = arith.constant 0 : index
    %c0_19 = arith.constant 0 : index
    %c0_20 = arith.constant 0 : index
    %70 = vector.load %arg3[%c0_18, %c0_19, %c0_20] : memref<1x8x256xi8, #tpu.memory_space<vmem>>, vector<1x8x256xi8>
    %71 = vector.shape_cast %70 : vector<1x8x256xi8> to vector<8x256xi8>
    %72 = vector.shape_cast %69 : vector<8x256xi8> to vector<1x8x256xi8>
    tpu.vector_store %arg3[%c0_18, %c0_19, %c0_20], %72 {strides = array<i32>} : memref<1x8x256xi8, #tpu.memory_space<vmem>>, vector<1x8x256xi8>,
    return
  }
  func.func @transform_0(%arg0: i32) -> (i32, i32, i32) {
    %c0_i32 = arith.constant 0 : i32
    %c0_i32_0 = arith.constant 0 : i32
    %c0_i32_1 = arith.constant 0 : i32
    return %arg0, %c0_i32, %c0_i32_0 : i32, i32, i32
  }
  func.func @transform_1(%arg0: i32) -> (i32, i32, i32) {
    %c0_i32 = arith.constant 0 : i32
    %c0_i32_0 = arith.constant 0 : i32
    %c0_i32_1 = arith.constant 0 : i32
    return %arg0, %c0_i32, %c0_i32_0 : i32, i32, i32
  }
  func.func @transform_2(%arg0: i32) -> (i32, i32, i32) {
    %c0_i32 = arith.constant 0 : i32
    %c0_i32_0 = arith.constant 0 : i32
    %c0_i32_1 = arith.constant 0 : i32
    return %arg0, %c0_i32, %c0_i32_0 : i32, i32, i32
  }
}

</mosaic_0001>

<bundles_post_ra>
// kernel: tpu_custom_call.1
= control target key start
LH: loop header
LB: loop body
LE: loop exit
PB: predicated region body
PF: predicated region fallthrough
CT: control target
= control target key end

     0   :  { %7 = vsyncpa [#allocation3], 0  ;;  %s1241_s0 = inlined_call_operand.hbm [shape: f32[2,2,256], index: 0, kind: input, shape index: {}]   ;;  %s1242_s1 = inlined_call_operand.hbm [shape: f32[2,8,256], index: 1, kind: input, shape index: {}]   ;;  %s1243_s2 = inlined_call_operand.hbm [shape: s8[2,8,256], index: 2, kind: output, shape index: {}]  }
   0x1   :  { %9 = vsyncpa [#allocation3 + $0x1], 0 }
   0x2   :  { %10 = vsyncpa [#allocation6], 0 }
   0x3   :  { %12 = vsyncpa [#allocation6 + $0x1], 0 }
   0x4   :  { %13 = vsyncpa [#allocation4], 0 }
   0x5   :  { %15 = vsyncpa [#allocation4 + $0x1], 0  ;;  %s918_s9 = smov 0   ;;  %s920_s10 = smov 0  }
   0x6   :  { %s922_s11 = smov 0   ;;  %s924_s12 = smov 0  }
   0x7 LB: > { %s939_s13 = sadd.s32 4294967295, %s874_s12   ;;  %s583_s14 = sadd.s32 4294967294, %s874_s12   ;;  %s874_s12 = sphi %s924_s12, %s1266_s12   ;;  %s870_s11 = sphi %s922_s11, %s1265_s11   ;;  %s866_s10 = sphi %s920_s10, %s1264_s10   ;;  %s862_s9 = sphi %s918_s9, %s1263_s9  }
   0x8   : > { %s943_s15 = sadd.s32 1, %s874_s12   ;;  %s28_s16 = sadd.s32 1, %s870_s11 }
   0x9   : > { %s25_s17 = ssub.s32 %s874_s12, %s943_s15  ;;  %p35_p0 = scmp.ne.s32.totalorder %s870_s11, %s866_s10 }
   0xa   : > { %p26_p1 = scmp.eq.s32.totalorder %s25_s17, 0  ;;  %p36_p2 = scmp.eq.s32.totalorder %s874_s12, 0 }
   0xb   : > { %p41_p3 = scmp.ne.s32.totalorder %s866_s10, %s862_s9  ;;  %p42_p4 = scmp.eq.s32.totalorder %s939_s13, 0 }
   0xc   : > { %s955_s18 = scalar_select %p26_p1, %s870_s11, %s28_s16  }
   0xd   : > { %p957_p5 = por %p36_p2, %p35_p0  ;;  %p961_p6 = por %p42_p4, %p41_p3 }
   0xe   : > { %p91_p7 = scmp.eq.s32.totalorder %s939_s13, 1  ;;  %p97_p8 = scmp.eq.s32.totalorder %s583_s14, 1 }
   0xf   : > { %p635_p10 = scmp.lt.s32.totalorder %s874_s12, 2  ;;  %s977_s23 = sand.u32 1, %s870_s11  }
  0x10   : > { %p968_p11 = por %p91_p7, %p35_p0  ;;  %p972_p12 = por %p97_p8, %p41_p3 }
  0x11   : > { %s603_s24 = sshll.u32 %s874_s12, 2  ;;  %s586_s25 = sshll.u32 %s977_s23, 2 }
  0x12   : > { %s126_s28 = scalar_lea.hbm %s1241_s0, %s603_s24  ;;  %s121_s30 = scalar_lea.vmem [#allocation2], %s586_s25 }
  0x13   : > { %s128_s29 = sshll.u32 %s126_s28, 4  ;;  %s130_s3 = sshll.u32 %s121_s30, 4  ;;  %s129_s29 = int_to_ptr.hbm [resolvable:$true] %s128_s29  ;;  %s131_s3 = int_to_ptr.vmem [resolvable:$true] %s130_s3 }
  0x14   : > { %p986_p13 = pnand %p635_p10, %p957_p5  ;;  %p592_p0 = scmp.ge.s32.totalorder %s874_s12, 1 }
  0x15   : > { %p155_p1 = scmp.lt.s32.totalorder %s874_s12, 3  ;;  %s589_s5 = sshll.u32 %s977_s23, 4 }
  0x16   : > { %s118_s6 = scalar_lea.sflag [#allocation3], %s977_s23  ;;  %s720_s7 = sshra.s32 %s129_s29, 4  ;;  %s721_s7 = int_to_ptr.hbm [resolvable:$true] %s720_s7 }
  0x17   : > { %s722_s8 = scalar_lea.hbm %s721_s7, 4  ;;  %p724_p3 = pneg %p986_p13 }
  0x18   : > { %p723_p2 = scmp.ne.s32.totalorder %s721_s7, %s722_s8  ;;  %s727_s17 = scalar_lea.hbm %s1241_s0, 8 }
  0x19   : > { %p728_p5 = scmp.lt.s32.totalorder %s721_s7, %s1241_s0  ;;  %p729_p8 = scmp.lt.s32.totalorder %s727_s17, %s722_s8 }
  0x1a   : > { %p725_p4 = pnand %p724_p3, %p723_p2 }
  0x1b   : > { %p730_p10 = por %p729_p8, %p728_p5 }
  0x1c   : > { %p726_p7 = pneg %p725_p4 }
  0x1e   : > { %p731_p9 = pnand %p730_p10, %p726_p7 }
  0x20   : > { %734 = shalt.err (!%p731_p9)
}
  0x21   : > { %627 = dma.hbm_to_vmem [thread:$0]  (!%p986_p13), %s129_s29, 64, %s131_s3, %s118_s6  }
  0x22   : > { %p1011_p2 = pnand %p592_p0, %p155_p1  ;;  %s604_s26 = sshll.u32 %s874_s12, 4 }
  0x23   : > { %s141_s27 = scalar_lea.vmem [#allocation5], %s589_s5  ;;  %s146_s8 = scalar_lea.hbm %s1242_s1, %s604_s26 }
  0x24   : > { %s150_s28 = sshll.u32 %s141_s27, 4  ;;  %s148_s14 = sshll.u32 %s146_s8, 4  ;;  %s151_s28 = int_to_ptr.vmem [resolvable:$true] %s150_s28  ;;  %s149_s14 = int_to_ptr.hbm [resolvable:$true] %s148_s14 }
  0x25   : > { %s138_s16 = scalar_lea.sflag [#allocation6], %s977_s23  ;;  %s750_s17 = sshra.s32 %s149_s14, 4  ;;  %s751_s17 = int_to_ptr.hbm [resolvable:$true] %s750_s17 }
  0x26   : > { %s752_s29 = scalar_lea.hbm %s751_s17, 16  ;;  %s757_s5 = scalar_lea.hbm %s1242_s1, 32 }
  0x27   : > { %p753_p9 = scmp.ne.s32.totalorder %s751_s17, %s752_s29  ;;  %p758_p4 = scmp.lt.s32.totalorder %s751_s17, %s1242_s1 }
  0x28   : > { %p759_p7 = scmp.lt.s32.totalorder %s757_s5, %s752_s29 }
  0x29   : > { %p755_p0 = pnand %p753_p9, %p724_p3 }
  0x2a   : > { %p760_p5 = por %p759_p7, %p758_p4 }
  0x2b   : > { %p756_p1 = pneg %p755_p0 }
  0x2d   : > { %p761_p8 = pnand %p760_p5, %p756_p1 }
  0x2f   : > { %764 = shalt.err (!%p761_p8)
}
  0x30   : > { %630 = dma.hbm_to_vmem [thread:$0]  (!%p986_p13), %s149_s14, 256, %s151_s28, %s138_s16  }
  0x31   : > { %159 = sbr.rel (%p1011_p2) target bundleno = 909 (0x38d), region = 28  ;;  %s1034_s23 = sand.u32 (!%p1011_p2), 1, %s866_s10  }
  0x32   : > { %s593_s26 = sshll.u32 (!%p1011_p2), %s1034_s23, 2  ;;  %s162_s27 = scalar_lea.sflag (!%p1011_p2), [#allocation3], %s1034_s23 }
  0x33   : > { %s165_s30 = scalar_lea.vmem (!%p1011_p2), [#allocation2], %s593_s26 }
  0x36   : > { %849 = dma.done.wait (%p961_p6), %s162_s27, 64  }
  0x37   : > { %851 = vsyncadd (%p961_p6), %s162_s27, 4294967232  ;;  %s594_s4 = sshll.u32 %s1034_s23, 4  ;;  %s172_s25 = scalar_lea.sflag [#allocation6], %s1034_s23 }
  0x38   : > { %s175_s28 = scalar_lea.vmem [#allocation5], %s594_s4 }
  0x39   : > { %853 = dma.done.wait (%p961_p6), %s172_s25, 256  }
  0x3a   : > { %855 = vsyncadd (%p961_p6), %s172_s25, 4294967040  ;;  %v204_v0 = vld [vmem:[%s165_s30] sm:$0xf]  ;;  %v205_v1 = vld [vmem:[%s175_s28] sm:$0xff]  ;;  %v900_v4 = vmov 0   ;;  %vm211_vm3 = vcmask 1040384  }
  0x3b   : > { %v206_v2 = vld [vmem:[%s175_s28 + $0x8] sm:$0xff]  ;;  %vm207_vm0 = vcmp.gt.f32.partialorder %v204_v0, 0.3  ;;  %vm270_vm1 = vcmp.ge.s32.totalorder %v205_v1, 0  ;;  %v272_v3 = vxor.u32 2147483647, %v205_v1 }
  0x3c   : > { %vm271_vm2 = vcmp.ge.s32.totalorder %v206_v2, 0  ;;  %v208_v5 = vsel %vm207_vm0, 1, %v900_v4  ;;  %v273_v6 = vxor.u32 2147483647, %v206_v2  ;;  %vm236_vm4 = vcmask 1041409   ;;  %s1074_s17 = scalar_lea.vmem [#allocation7], %s593_s26 }
  0x3d   : > { %v209_v7 = vperm.slane %v208_v5, 0  ;;  %v210_v8 = vperm.slane %v208_v5, 2  ;;  %v1051_v9 = vsel %vm270_vm1, %v205_v1, %v272_v3  ;;  %v234_v10 = vperm.slane %v208_v5, 1  ;;  %s1076_s29 = smov 1073741824   ;;  %s1080_s3 = smov 0  }
  0x3e   : > { %v1053_v11 = vsel %vm271_vm2, %v206_v2, %v273_v6  ;;  %vm276_vm5 = vcmp.ge.s32.totalorder %v1051_v9, 0  ;;  %v235_v12 = vperm.slane %v208_v5, 3 }
  0x3f   : > { %v212_v13 = vsel %vm211_vm3, %v209_v7, 0  ;;  %v213_v14 = vsel %vm211_vm3, %v210_v8, 0  ;;  %v1056_v15 = vperm.slane %v209_v7, 0  ;;  %v1058_v16 = vperm.slane %v210_v8, 0 }
  0x40   : > { %v214_v17 = vadd.s32 %v213_v14, %v212_v13  ;;  %vm277_vm6 = vcmp.ge.s32.totalorder %v1053_v11, 0  ;;  %v237_v18 = vsel %vm236_vm4, %v234_v10, 0  ;;  %v238_v19 = vsel %vm236_vm4, %v235_v12, 0 }
  0x41   : > { %vm266_vm7 = vcmp.eq.s32.totalorder %v1056_v15, 1  ;;  %vm267_vm8 = vcmp.eq.s32.totalorder %v1058_v16, 1  ;;  %v239_v22 = vadd.s32 %v238_v19, %v237_v18 }
  0x42   : > { %v216_v20 = vshrl.u32 %v214_v17, 16  ;;  %v215_v21 = vand.u32 65535, %v214_v17  ;;  %vm278_vm9 = vmand %vm266_vm7, %vm276_vm5 }
  0x43   : > { %vm279_vm10 = vmand %vm267_vm8, %vm277_vm6  ;;  %v280_v23 = vsel %vm278_vm9, 1, %v900_v4  ;;  %v241_v28 = vshrl.u32 %v239_v22, 16  ;;  %v240_v29 = vand.u32 65535, %v239_v22 }
  0x44   : > { %v218_v24 = vcvt.s32.f32 %v216_v20  ;;  %v217_v25 = vcvt.s32.f32 %v215_v21  ;;  %v281_v26 = vsel %vm279_vm10, 1, %v900_v4 }
  0x45   : > { %v282_v27 = vadd.s32 %v281_v26, %v280_v23  ;;  %v243_v32 = vcvt.s32.f32 %v241_v28  ;;  %v242_v33 = vcvt.s32.f32 %v240_v29 }
  0x46   : > { %221 = vadd.xlane.f32.xlu0 %v218_v24  ;;  %219 = vadd.xlane.f32.xlu1 %v217_v25 }
  0x47   : > { %v284_v30 = vshrl.u32 %v282_v27, 16  ;;  %v283_v34 = vand.u32 65535, %v282_v27 }
  0x49   : > { %v286_v31 = vcvt.s32.f32 %v284_v30  ;;  %v285_v35 = vcvt.s32.f32 %v283_v34 }
  0x4b   : > { %289 = vadd.xlane.f32.xlu2 %v286_v31 }
  0x4e   : > { %246 = vadd.xlane.f32.xlu0 %v243_v32  ;;  %244 = vadd.xlane.f32.xlu1 %v242_v33 }
  0x53   : > { %287 = vadd.xlane.f32.xlu2 %v285_v35 }
  0xb9   : > { %v222_v36 = vpop.xlane.xlu0 %221  ;;  %v220_v37 = vpop.xlane.xlu1 %219 }
  0xba   : > { %v224_v38 = vcvt.f32.s32 %v222_v36  ;;  %v223_v39 = vcvt.f32.s32 %v220_v37 }
  0xbc   : > { %v225_v40 = vshll.u32 %v224_v38, 16 }
  0xbe   : > { %v226_v41 = vadd.s32 %v225_v40, %v223_v39  ;;  %v290_v42 = vpop.xlane.xlu2 %289 }
  0xbf   : > { %v292_v44 = vcvt.f32.s32 %v290_v42 }
  0xc0   : > { %v227_v43 = vrot.slane %v226_v41, 4 }
  0xc1   : > { %v247_v45 = vpop.xlane.xlu0 %246  ;;  %v245_v46 = vpop.xlane.xlu1 %244  ;;  %v293_v52 = vshll.u32 %v292_v44, 16 }
  0xc2   : > { %v249_v47 = vcvt.f32.s32 %v247_v45  ;;  %v248_v48 = vcvt.f32.s32 %v245_v46  ;;  %v228_v49 = vadd.s32 %v227_v43, %v226_v41 }
  0xc4   : > { %v250_v50 = vshll.u32 %v249_v47, 16  ;;  %v229_v51 = vrot.slane %v228_v49, 2 }
  0xc6   : > { %v251_v53 = vadd.s32 %v250_v50, %v248_v48  ;;  %v288_v54 = vpop.xlane.xlu2 %287  ;;  %v230_v55 = vadd.s32 %v229_v51, %v228_v49 }
  0xc7   : > { %v291_v56 = vcvt.f32.s32 %v288_v54 }
  0xc8   : > { %v252_v57 = vrot.slane %v251_v53, 4  ;;  %v231_v58 = vrot.slane %v230_v55, 1 }
  0xc9   : > { %v294_v59 = vadd.s32 %v293_v52, %v291_v56 }
  0xca   : > { %v253_v60 = vadd.s32 %v252_v57, %v251_v53  ;;  %v232_v61 = vadd.s32 %v231_v58, %v230_v55 }
  0xcb   : > { %v295_v62 = vrot.slane %v294_v59, 4 }
  0xcc   : > { %606 = vpush %v232_v61  ;;  %v254_v63 = vrot.slane %v253_v60, 2 }
  0xcd   : > { %v296_v0 = vadd.s32 %v295_v62, %v294_v59 }
  0xce   : > { %v255_v1 = vadd.s32 %v254_v63, %v253_v60 }
  0xcf   : > { %v297_v2 = vrot.slane %v296_v0, 2 }
  0xd0   : > { %v256_v3 = vrot.slane %v255_v1, 1 }
  0xd1   : > { %v298_v5 = vadd.s32 %v297_v2, %v296_v0 }
  0xd2   : > { %v257_v6 = vadd.s32 %v256_v3, %v255_v1 }
  0xd3   : > { %v299_v7 = vrot.slane %v298_v5, 1 }
  0xd4   : > { %608 = vpush %v257_v6 }
  0xd5   : > { %v300_v8 = vadd.s32 %v299_v7, %v298_v5 }
  0xd7   : > { %610 = vpush %v300_v8 }
  0xfd   : > { %s607_s20 = spop %606 }
  0xfe   : > { %s596_s8 = sshll.u32 %s607_s20, 3 }
 0x105   : > { %s609_s7 = spop %608 }
 0x106   : > { %p259_p6 = scmp.gt.s32.totalorder %s609_s7, 1 }
 0x108   : > { %s1268_s7 = smov (!%p259_p6, %s609_s7), 1  ;;  %s611_s14 = spop %610 }
 0x109   : > { %p262_p13 = scmp.lt.s32.totalorder %s1268_s7, %s596_s8 }
 0x10b   : > { %s1270_s7 = smov (!%p262_p13, %s1268_s7), %s596_s8 }
 0x10c   : > { %p302_p3 = scmp.ge.s32.totalorder %s611_s14, %s1270_s7 }
 0x10e   : > { %s303_s16 = scalar_select %p302_p3, 0, 2147483648  }
 0x10f LB: >> { %s1093_s6 = sadd.s32 %s878_s29, %s882_s16  ;;  %s342_s5 = sshra.s32 %s878_s29, 1   ;;  %v901_v12 = vmov 0   ;;  %s886_s3 = sphi %s1080_s3, %s309_s3   ;;  %s882_s16 = sphi %s303_s16, %s1251_s16   ;;  %s878_s29 = sphi %s1076_s29, %s1250_s29  }
 0x110   : >> { %v313_v10 = vstv %s1093_s6  ;;  %s309_s3 = sadd.s32 1, %s886_s3   ;;  %s1250_s29 = smov %s342_s5 }
 0x111   : >> { %vm314_vm11 = vcmp.ge.s32.totalorder %v1051_v9, %v313_v10  ;;  %vm315_vm12 = vcmp.ge.s32.totalorder %v1053_v11, %v313_v10  ;;  %p306_p2 = scmp.ge.s32.totalorder %s309_s3, 31  }
 0x112   : >> { %vm316_vm13 = vmand %vm266_vm7, %vm314_vm11  ;;  %v375_v54 = vlaneseq (%p306_p2)  ;;  %s1156_s27 = smov (%p306_p2), 1024   ;;  %s1158_s30 = smov (%p306_p2), 0  }
 0x113   : >> { %vm317_vm14 = vmand %vm267_vm8, %vm315_vm12  ;;  %v318_v13 = vsel %vm316_vm13, 1, %v901_v12  ;;  %s1160_s4 = smov (%p306_p2), 0  }
 0x114   : >> { %v319_v14 = vsel %vm317_vm14, 1, %v901_v12  ;;  %v1149_v55 = vshrl.u32 (%p306_p2), %v375_v54, 7  ;;  %v378_v56 = vand.u32 (%p306_p2), 127, %v375_v54 }
 0x115   : >> { %v320_v17 = vadd.s32 %v319_v14, %v318_v13 }
 0x116   : > { %v379_v57 = vadd.s32 (%p306_p2), 128, %v378_v56  ;;  %v380_v58 = vmul.u32 (%p306_p2), 256, %v1149_v55 }
 0x117   : >> { %v322_v18 = vshrl.u32 %v320_v17, 16  ;;  %v321_v20 = vand.u32 65535, %v320_v17 }
 0x118   : > { %v381_v59 = vadd.s32 (%p306_p2), %v380_v58, %v378_v56  ;;  %v382_v60 = vadd.s32 (%p306_p2), %v380_v58, %v379_v57 }
 0x119   : >> { %v324_v19 = vcvt.s32.f32 %v322_v18  ;;  %v323_v21 = vcvt.s32.f32 %v321_v20 }
 0x11b   : >> { %327 = vadd.xlane.f32.xlu0 %v324_v19 }
 0x123   : >> { %325 = vadd.xlane.f32.xlu0 %v323_v21 }
 0x18e   : >> { %v328_v22 = vpop.xlane.xlu0 %327 }
 0x18f   : >> { %v330_v23 = vcvt.f32.s32 %v328_v22 }
 0x191   : >> { %v331_v25 = vshll.u32 %v330_v23, 16 }
 0x196   : >> { %v326_v24 = vpop.xlane.xlu0 %325 }
 0x197   : >> { %v329_v26 = vcvt.f32.s32 %v326_v24 }
 0x199   : >> { %v332_v27 = vadd.s32 %v331_v25, %v329_v26 }
 0x19b   : >> { %v333_v28 = vrot.slane %v332_v27, 4 }
 0x19d   : >> { %v334_v29 = vadd.s32 %v333_v28, %v332_v27 }
 0x19f   : >> { %v335_v30 = vrot.slane %v334_v29, 2 }
 0x1a1   : >> { %v336_v31 = vadd.s32 %v335_v30, %v334_v29 }
 0x1a3   : >> { %v337_v32 = vrot.slane %v336_v31, 1 }
 0x1a5   : >> { %v338_v33 = vadd.s32 %v337_v32, %v336_v31 }
 0x1a7   : >> { %612 = vpush %v338_v33 }
 0x1d8   : >> { %s613_s19 = spop %612  ;;  %308 = sbr.rel (!%p306_p2) target bundleno = 271 (0x10f), region = 100 }
 0x1d9   : >> { %p340_p10 = scmp.ge.s32.totalorder %s613_s19, %s1270_s7 }
 0x1db   : >> { %s1272_s6 = smov (!%p340_p10, %s1093_s6), %s882_s16 }
 0x1dc   : >> { %s1251_s16 = smov %s1272_s6  ;;  %v343_v34 = vstv (%p306_p2), %s1272_s6 }
 0x1dd   : > { %vm344_vm15 = vcmp.gt.s32.totalorder %v1051_v9, %v343_v34  ;;  %vm345_vm0 = vcmp.gt.s32.totalorder %v1053_v11, %v343_v34  ;;  %vm348_vm1 = vcmp.eq.s32.totalorder %v1051_v9, %v343_v34  ;;  %vm349_vm3 = vcmp.eq.s32.totalorder %v1053_v11, %v343_v34 }
 0x1de   : > { %vm1120_vm2 = vmand %vm266_vm7, %vm344_vm15 }
 0x1df   : > { %vm1127_vm4 = vmand %vm267_vm8, %vm345_vm0  ;;  %v352_v37 = vsel %vm1120_vm2, 1, %v900_v4 }
 0x1e0   : > { %vm1136_vm5 = vmand %vm266_vm7, %vm348_vm1  ;;  %v353_v11 = vsel %vm1127_vm4, 1, %v900_v4 }
 0x1e1   : > { %vm1145_vm6 = vmand %vm267_vm8, %vm349_vm3  ;;  %v354_v39 = vadd.s32 %v353_v11, %v352_v37 }
 0x1e3   : > { %v356_v40 = vshrl.u32 %v354_v39, 16  ;;  %v355_v42 = vand.u32 65535, %v354_v39 }
 0x1e5   : > { %v358_v41 = vcvt.s32.f32 %v356_v40  ;;  %v357_v15 = vcvt.s32.f32 %v355_v42 }
 0x1e7   : > { %361 = vadd.xlane.f32.xlu0 %v358_v41 }
 0x1ef   : > { %359 = vadd.xlane.f32.xlu0 %v357_v15 }
 0x25a   : > { %v362_v43 = vpop.xlane.xlu0 %361 }
 0x25b   : > { %v364_v44 = vcvt.f32.s32 %v362_v43 }
 0x25d   : > { %v365_v46 = vshll.u32 %v364_v44, 16 }
 0x262   : > { %v360_v45 = vpop.xlane.xlu0 %359 }
 0x263   : > { %v363_v47 = vcvt.f32.s32 %v360_v45 }
 0x265   : > { %v366_v48 = vadd.s32 %v365_v46, %v363_v47 }
 0x267   : > { %v367_v49 = vrot.slane %v366_v48, 4 }
 0x269   : > { %v368_v16 = vadd.s32 %v367_v49, %v366_v48 }
 0x26b   : > { %v369_v50 = vrot.slane %v368_v16, 2 }
 0x26d   : > { %v370_v51 = vadd.s32 %v369_v50, %v368_v16 }
 0x26f   : > { %v371_v52 = vrot.slane %v370_v51, 1 }
 0x271   : > { %v372_v53 = vadd.s32 %v371_v52, %v370_v51 }
 0x273   : > { %614 = vpush %v372_v53 }
 0x2a4   : > { %s1152_s24 = spop %614 }
 0x2a5   : > { %s374_s26 = ssub.s32 %s1270_s7, %s1152_s24 }
 0x2a6 LB: >> { %s597_s25 = sadd.s32 4294967295, %s890_s27  ;;  %s423_s28 = sshra.s32 %s890_s27, 1   ;;  %v902_v62 = vmov 0   ;;  %s898_s4 = sphi %s1160_s4, %s388_s4   ;;  %s894_s30 = sphi %s1158_s30, %s1261_s30   ;;  %s890_s27 = sphi %s1156_s27, %s1260_s27  }
 0x2a7   : >> { %s392_s20 = sadd.s32 %s894_s30, %s597_s25  ;;  %s421_s14 = sadd.s32 %s890_s27, %s894_s30 }
 0x2a8   : >> { %v393_v61 = vstv %s392_s20  ;;  %s388_s4 = sadd.s32 1, %s898_s4   ;;  %s1260_s27 = smov %s423_s28 }
 0x2a9   : >> { %vm394_vm7 = vcmp.le.s32.totalorder %v381_v59, %v393_v61  ;;  %vm395_vm8 = vcmp.le.s32.totalorder %v382_v60, %v393_v61  ;;  %p385_p0 = scmp.ge.s32.totalorder %s388_s4, 11  }
 0x2aa   : >> { %vm396_vm9 = vmand %vm1136_vm5, %vm394_vm7  ;;  %vm431_vm15 = vcmp.lt.s32.totalorder (%p385_p0), %v1149_v55, 1  ;;  %s605_s7 = sshll.u32 (%p385_p0), %s939_s13, 2  ;;  %s465_s5 = sshll.u32 (%p385_p0), %s1074_s17, 4  ;;  %s466_s5 = int_to_ptr.vmem [resolvable:$true] %s465_s5 }
 0x2ab   : >> { %vm397_vm10 = vmand %vm1145_vm6, %vm395_vm8  ;;  %v398_v63 = vsel %vm396_vm9, 1, %v902_v62  ;;  %s463_s6 = scalar_lea.hbm (%p385_p0), %s1243_s2, %s605_s7  ;;  %s452_s13 = scalar_lea.sflag (%p385_p0), [#allocation4], %s1034_s23 }
 0x2ac   : >> { %v399_v0 = vsel %vm397_vm10, 1, %v902_v62  ;;  %s467_s19 = sshll.u32 (%p385_p0), %s463_s6, 4  ;;  %s800_s4 = scalar_lea.hbm (%p385_p0), %s1243_s2, 8  ;;  %s468_s19 = int_to_ptr.hbm [resolvable:$true] %s467_s19 }
 0x2ad   : >> { %v400_v1 = vadd.s32 %v399_v0, %v398_v63  ;;  %s794_s24 = sshra.s32 (%p385_p0), %s468_s19, 4  ;;  %s795_s24 = int_to_ptr.hbm [resolvable:$true] %s794_s24 }
 0x2ae   : > { %p801_p5 = scmp.lt.s32.totalorder (%p385_p0), %s795_s24, %s1243_s2 }
 0x2af   : >> { %v402_v2 = vshrl.u32 %v400_v1, 16  ;;  %v401_v5 = vand.u32 65535, %v400_v1 }
 0x2b1   : >> { %v404_v3 = vcvt.s32.f32 %v402_v2  ;;  %v403_v6 = vcvt.s32.f32 %v401_v5 }
 0x2b3   : >> { %407 = vadd.xlane.f32.xlu0 %v404_v3 }
 0x2bb   : >> { %405 = vadd.xlane.f32.xlu0 %v403_v6 }
 0x326   : >> { %v408_v7 = vpop.xlane.xlu0 %407 }
 0x327   : >> { %v410_v8 = vcvt.f32.s32 %v408_v7 }
 0x329   : >> { %v411_v12 = vshll.u32 %v410_v8, 16 }
 0x32e   : >> { %v406_v10 = vpop.xlane.xlu0 %405 }
 0x32f   : >> { %v409_v13 = vcvt.f32.s32 %v406_v10 }
 0x331   : >> { %v412_v14 = vadd.s32 %v411_v12, %v409_v13 }
 0x333   : >> { %v413_v17 = vrot.slane %v412_v14, 4 }
 0x335   : >> { %v414_v18 = vadd.s32 %v413_v17, %v412_v14 }
 0x337   : >> { %v415_v19 = vrot.slane %v414_v18, 2 }
 0x339   : >> { %v416_v20 = vadd.s32 %v415_v19, %v414_v18 }
 0x33b   : >> { %v417_v21 = vrot.slane %v416_v20, 1 }
 0x33d   : >> { %v418_v22 = vadd.s32 %v417_v21, %v416_v20 }
 0x33f   : >> { %616 = vpush %v418_v22 }
 0x370   : >> { %s617_s8 = spop %616 }
 0x371   : >> { %p420_p9 = scmp.ge.s32.totalorder %s617_s8, %s374_s26  ;;  %387 = sbr.rel (!%p385_p0) target bundleno = 678 (0x2a6), region = 111 }
 0x372   : > { %s796_s26 = scalar_lea.hbm (%p385_p0), %s795_s24, 4 }
 0x373   : >> { %s422_s16 = scalar_select %p420_p9, %s894_s30, %s421_s14  }
 0x374   : > { %p797_p1 = scmp.ne.s32.totalorder (%p385_p0), %s795_s24, %s796_s26  ;;  %p802_p8 = scmp.lt.s32.totalorder (%p385_p0), %s800_s4, %s796_s26 }
 0x375   : >> { %s1261_s30 = smov %s422_s16  ;;  %v424_v23 = vstv (%p385_p0), %s422_s16 }
 0x376   : > { %vm425_vm11 = vcmp.le.s32.totalorder %v381_v59, %v424_v23  ;;  %vm426_vm12 = vcmp.le.s32.totalorder %v382_v60, %v424_v23  ;;  %p798_p4 = pnand %p797_p1, %p968_p11  ;;  %p803_p6 = por %p802_p8, %p801_p5 }
 0x377   : > { %vm427_vm13 = vmand %vm1136_vm5, %vm425_vm11 }
 0x378   : > { %vm428_vm14 = vmand %vm1145_vm6, %vm426_vm12  ;;  %p799_p7 = pneg %p798_p4 }
 0x379   : > { %vm429_vm0 = vmor %vm1120_vm2, %vm427_vm13 }
 0x37a   : > { %vm430_vm1 = vmor %vm1127_vm4, %vm428_vm14  ;;  %p804_p13 = pnand %p803_p6, %p799_p7 }
 0x37b   : > { %vm432_vm3 = vmor %vm429_vm0, %vm431_vm15 }
 0x37c   : > { %vm433_vm7 = vmor %vm430_vm1, %vm431_vm15 }
 0x37d   : > { %vm434_vm8 = vmpackc.low %vm432_vm3, %vm432_vm3 }
 0x37e   : > { %v435_v24 = vsel %vm434_vm8, 16711935, %v900_v4  ;;  %vm439_vm9 = vmpackc.low %vm433_vm7, %vm433_vm7 }
 0x37f   : > { %v437_v25 = vpack.c.b8 %v435_v24, %v435_v24  ;;  %v440_v26 = vsel %vm439_vm9, 16711935, %v900_v4 }
 0x380   : > { %v442_v27 = vpack.c.b8 %v440_v26, %v440_v26 }
 0x381   : > { %vm438_vm5 = vnez %v437_v25 }
 0x382   : > { %vm443_vm6 = vnez %v442_v27  ;;  %v444_v28 = vsel %vm438_vm5, 16843009, %v900_v4 }
 0x383   : > { %v445_v29 = vsel %vm443_vm6, 16843009, %v900_v4  ;;  %v446_v30 = vunpack.c.0.s8 %v444_v28 }
 0x384   : > { %v447_v31 = vunpack.c.0.s8 %v445_v29 }
 0x386   : > { %v448_v32 = vpack.c.b16 %v447_v31, %v446_v30 }
 0x388   : > { %v449_v33 = vpack.c.b8 %v448_v32, %v448_v32 }
 0x38a   : > { %450 = vst [vmem:[%s1074_s17] sm:$0xf] %v449_v33 }
 0x38b   : > { %807 = shalt.err (!%p804_p13)
}
 0x38c   : > { %622 = dma.vmem_to_hbm [thread:$0]  (%p968_p11), %s466_s5, 64, %s468_s19, %s452_s13  }
 0x38d PF: > { %s479_s23 = sand.u32 1, %s862_s9   ;;  %p1262_p3 = scmp.ge.s32.totalorder %s874_s12, 2 }
 0x38e   : > { %s480_s17 = scalar_lea.sflag [#allocation4], %s479_s23 }
 0x38f   : > { %p632_p10 = pnand %p1262_p3, %p972_p12 }
 0x391   : > { %p633_p2 = pneg %p632_p10 }
 0x393   : > { %857 = dma.done.wait (%p633_p2), %s480_s17, 64  }
 0x394   : > { %859 = vsyncadd (%p633_p2), %s480_s17, 4294967232  ;;  %p18_p9 = scmp.ge.s32.totalorder %s943_s15, 4   ;;  %s1263_s9 = smov %s866_s10 }
 0x395   : > { %s1264_s10 = smov %s870_s11  ;;  %s1265_s11 = smov %s955_s18 }
 0x396   : > { %s1266_s12 = smov %s943_s15  ;;  %20 = sbr.rel (!%p18_p9) target bundleno = 7 (0x7), region = 122 }
 0x39b   :  { %486 = vsyncpa [#allocation3], 1 }
 0x39c   :  { %488 = vsyncpa [#allocation3 + $0x1], 1 }
 0x39d   :  { %489 = vsyncpa [#allocation6], 1 }
 0x39e   :  { %491 = vsyncpa [#allocation6 + $0x1], 1 }
 0x39f   :  { %492 = vsyncpa [#allocation4], 1 }
 0x3a0   :  { %494 = vsyncpa [#allocation4 + $0x1], 1 }

</bundles_post_ra>
